<compile_context>
chip_gen: v7x
topology: tpu7x:2x2x1
jax: 0.10.0
libtpu: 0.0.40
codegen_flags: <defaults>
</compile_context>

<pallas_src>
import functools

import jax
import jax.numpy as jnp
from jax.experimental import pallas as pl
from jax.experimental.pallas import tpu as pltpu

_LANE = 128
_SUBLANE = 8
_TILE_ROWS = 2048          # 2048 * 128 * 4 B = 1 MiB per input block
_MIN_PALLAS_N = 1024       # below this, kernel launch overhead dominates


def _label_distance_kernel(pred_ref, targ_ref, out_ref, acc_ref, *, modulus):
    j = pl.program_id(1)

    @pl.when(j == 0)
    def _init():
        acc_ref[...] = jnp.zeros_like(acc_ref)

    p = pred_ref[...].astype(jnp.float32)   # required on v5e if inputs are bf16
    t = targ_ref[...].astype(jnp.float32)
    if modulus is not None:
        inv_m = 1.0 / modulus               # Python constant -> no f32 divide
        p = p - jnp.floor(p * inv_m) * modulus
        t = t - jnp.floor(t * inv_m) * modulus
    d = p - t
    # Sublane-axis reduce keeps a lane-resident (1, 128) partial; the single
    # cross-lane reduce is deferred to the wrapper (off the XLU hot path).
    acc_ref[...] += jnp.sum(d * d, axis=0, keepdims=True)

    @pl.when(j == pl.num_programs(1) - 1)
    def _finalize():
        out_ref[...] = acc_ref[...]


def _round_up(x, m):
    return ((x + m - 1) // m) * m


def label_distance(pred, target, bins_per_semitone: int, mode: str = "absolute"):
    """MSE-based label distance, matching Label_Distance.forward."""
    assert mode in ("absolute", "octave")
    assert pred.shape == target.shape and pred.ndim == 1
    n = pred.shape[0]
    modulus = float(12 * bins_per_semitone) if mode == "octave" else None

    # Tiny batches: plain jnp is cheaper than a pallas_call launch.
    if n < _MIN_PALLAS_N:
        p = pred.astype(jnp.float32)
        t = target.astype(jnp.float32)
        if modulus is not None:
            p = jnp.mod(p, modulus)
            t = jnp.mod(t, modulus)
        return jnp.mean((p - t) ** 2)

    # Pack into sublane-dense (rows, 128); zero-pad (pads contribute 0).
    rows = pl.cdiv(n, _LANE)
    tile_rows = min(_TILE_ROWS, _round_up(rows, _SUBLANE))
    nblocks = pl.cdiv(rows, tile_rows)
    p_split = 2 if nblocks >= 2 else 1          # v7x: one half per TensorCore
    blocks_per_p = pl.cdiv(nblocks, p_split)
    rows_pad = p_split * blocks_per_p * tile_rows
    n_pad = rows_pad * _LANE

    def to2d(x):
        x = x.astype(jnp.float32)
        x = jnp.pad(x, (0, n_pad - n))
        return x.reshape(rows_pad, _LANE)

    pred2d = to2d(pred)
    targ2d = to2d(target)

    kernel = functools.partial(_label_distance_kernel, modulus=modulus)

    partials = pl.pallas_call(
        kernel,
        out_shape=jax.ShapeDtypeStruct((p_split, _LANE), jnp.float32),
        grid_spec=pltpu.PrefetchScalarGridSpec(
            num_scalar_prefetch=0,
            grid=(p_split, blocks_per_p),
            in_specs=[
                pl.BlockSpec((tile_rows, _LANE),
                             lambda p, j: (p * blocks_per_p + j, 0)),
                pl.BlockSpec((tile_rows, _LANE),
                             lambda p, j: (p * blocks_per_p + j, 0)),
            ],
            out_specs=pl.BlockSpec((1, _LANE), lambda p, j: (p, 0)),
            scratch_shapes=[pltpu.VMEM((1, _LANE), jnp.float32)],
        ),
        compiler_params=pltpu.CompilerParams(
            dimension_semantics=("parallel", "arbitrary")),
    )(pred2d, targ2d)

    # Single cross-lane reduce + constant-reciprocal mean.
    return jnp.sum(partials) * jnp.float32(1.0 / n)


if __name__ == "__main__":
    key = jax.random.PRNGKey(0)
    k1, k2, k3, k4 = jax.random.split(key, 4)

    bins_per_semitone = 5
    hi = 12.0 * bins_per_semitone * 8  # pitch-like continuous labels
    m = 12.0 * bins_per_semitone

    # --- Pallas-kernel path (batch large enough to tile; exercises padding) ---
    batch = 5000
    pred = jax.random.uniform(k1, (batch,), jnp.float32, 0.0, hi)
    target = jax.random.uniform(k2, (batch,), jnp.float32, 0.0, hi)

    loss_abs = jax.block_until_ready(
        label_distance(pred, target, bins_per_semitone, mode="absolute"))
    ref_abs = jnp.mean((pred - target) ** 2)

    loss_oct = jax.block_until_ready(
        label_distance(pred, target, bins_per_semitone, mode="octave"))
    ref_oct = jnp.mean((jnp.mod(pred, m) - jnp.mod(target, m)) ** 2)

    assert jnp.allclose(loss_abs, ref_abs, rtol=1e-4, atol=1e-4)
    assert jnp.allclose(loss_oct, ref_oct, rtol=1e-4, atol=1e-4)

    # --- Tiny-batch fallback path (plain jnp; no kernel launch) ---
    small = 8
    pred_s = jax.random.uniform(k3, (small,), jnp.float32, 0.0, hi)
    targ_s = jax.random.uniform(k4, (small,), jnp.float32, 0.0, hi)
    loss_s = jax.block_until_ready(
        label_distance(pred_s, targ_s, bins_per_semitone, mode="octave"))
    ref_s = jnp.mean((jnp.mod(pred_s, m) - jnp.mod(targ_s, m)) ** 2)
    assert jnp.allclose(loss_s, ref_s, rtol=1e-4, atol=1e-4)

    print("KERNEL_OK")
</pallas_src>

<mosaic_0001>
module attributes {stable_mosaic.version = 11 : i64} {
  func.func @_label_distance_kernel(%arg0: i32, %arg1: i32, %arg2: memref<40x128xf32, #tpu.memory_space<vmem>>, %arg3: memref<40x128xf32, #tpu.memory_space<vmem>>, %arg4: memref<1x128xf32, #tpu.memory_space<vmem>>, %arg5: memref<1x128xf32, #tpu.memory_space<vmem>>) attributes {dimension_semantics = [#tpu.dimension_semantics<parallel>, #tpu.dimension_semantics<arbitrary>], iteration_bounds = array<i64: 1, 1>, scalar_prefetch = 0 : i64, scratch_operands = 1 : i64, tpu.core_type = #tpu.core_type<tc>, window_params = [{transform_indices = @transform_0, window_bounds = array<i64: 40, 128>}, {transform_indices = @transform_1, window_bounds = array<i64: 40, 128>}, {transform_indices = @transform_2, window_bounds = array<i64: 1, 128>}]} {
    %c0_i32 = arith.constant 0 : i32
    %0 = arith.cmpi eq, %arg1, %c0_i32 : i32
    %1 = arith.extui %0 : i1 to i32
    %c0_i32_0 = arith.constant 0 : i32
    %2 = arith.cmpi ne, %1, %c0_i32_0 : i32
    scf.if %2 {
      %cst_10 = arith.constant 0.000000e+00 : f32
      %15 = vector.broadcast %cst_10 : f32 to vector<1x128xf32>
      %c0_11 = arith.constant 0 : index
      %c0_12 = arith.constant 0 : index
      %16 = vector.load %arg5[%c0_11, %c0_12] : memref<1x128xf32, #tpu.memory_space<vmem>>, vector<1x128xf32>
      tpu.vector_store %arg5[%c0_11, %c0_12], %15 {strides = array<i32>} : memref<1x128xf32, #tpu.memory_space<vmem>>, vector<1x128xf32>,
    } else {
    }
    %c0 = arith.constant 0 : index
    %c0_1 = arith.constant 0 : index
    %3 = vector.load %arg2[%c0, %c0_1] : memref<40x128xf32, #tpu.memory_space<vmem>>, vector<40x128xf32>
    %c0_2 = arith.constant 0 : index
    %c0_3 = arith.constant 0 : index
    %4 = vector.load %arg3[%c0_2, %c0_3] : memref<40x128xf32, #tpu.memory_space<vmem>>, vector<40x128xf32>
    %5 = arith.subf %3, %4 : vector<40x128xf32>
    %c0_4 = arith.constant 0 : index
    %c0_5 = arith.constant 0 : index
    %6 = vector.load %arg5[%c0_4, %c0_5] : memref<1x128xf32, #tpu.memory_space<vmem>>, vector<1x128xf32>
    %7 = arith.mulf %5, %5 : vector<40x128xf32>
    %cst = arith.constant dense<0.000000e+00> : vector<128xf32>
    %8 = vector.multi_reduction <add>, %7, %cst [0] : vector<40x128xf32> to vector<128xf32>
    %9 = vector.shape_cast %8 : vector<128xf32> to vector<1x128xf32>
    %10 = arith.addf %6, %9 : vector<1x128xf32>
    %c0_6 = arith.constant 0 : index
    %c0_7 = arith.constant 0 : index
    %11 = vector.load %arg5[%c0_6, %c0_7] : memref<1x128xf32, #tpu.memory_space<vmem>>, vector<1x128xf32>
    tpu.vector_store %arg5[%c0_6, %c0_7], %10 {strides = array<i32>} : memref<1x128xf32, #tpu.memory_space<vmem>>, vector<1x128xf32>,
    %c0_i32_8 = arith.constant 0 : i32
    %12 = arith.cmpi eq, %arg1, %c0_i32_8 : i32
    %13 = arith.extui %12 : i1 to i32
    %c0_i32_9 = arith.constant 0 : i32
    %14 = arith.cmpi ne, %13, %c0_i32_9 : i32
    scf.if %14 {
      %c0_10 = arith.constant 0 : index
      %c0_11 = arith.constant 0 : index
      %15 = vector.load %arg5[%c0_10, %c0_11] : memref<1x128xf32, #tpu.memory_space<vmem>>, vector<1x128xf32>
      %c0_12 = arith.constant 0 : index
      %c0_13 = arith.constant 0 : index
      %16 = vector.load %arg4[%c0_12, %c0_13] : memref<1x128xf32, #tpu.memory_space<vmem>>, vector<1x128xf32>
      tpu.vector_store %arg4[%c0_12, %c0_13], %15 {strides = array<i32>} : memref<1x128xf32, #tpu.memory_space<vmem>>, vector<1x128xf32>,
    } else {
    }
    return
  }
  func.func @transform_0(%arg0: i32, %arg1: i32) -> (i32, i32) {
    %c1_i32 = arith.constant 1 : i32
    %0 = arith.muli %arg0, %c1_i32 : i32
    %1 = arith.addi %0, %arg1 : i32
    %c0_i32 = arith.constant 0 : i32
    %c0_i32_0 = arith.constant 0 : i32
    return %1, %c0_i32 : i32, i32
  }
  func.func @transform_1(%arg0: i32, %arg1: i32) -> (i32, i32) {
    %c1_i32 = arith.constant 1 : i32
    %0 = arith.muli %arg0, %c1_i32 : i32
    %1 = arith.addi %0, %arg1 : i32
    %c0_i32 = arith.constant 0 : i32
    %c0_i32_0 = arith.constant 0 : i32
    return %1, %c0_i32 : i32, i32
  }
  func.func @transform_2(%arg0: i32, %arg1: i32) -> (i32, i32) {
    %c0_i32 = arith.constant 0 : i32
    %c0_i32_0 = arith.constant 0 : i32
    return %arg0, %c0_i32 : i32, i32
  }
}

</mosaic_0001>

<bundles_post_ra>
// kernel: tpu_custom_call.1
= control target key start
LH: loop header
LB: loop body
LE: loop exit
PB: predicated region body
PF: predicated region fallthrough
CT: control target
= control target key end

     0   :  { %7 = vsyncpa [#allocation4], 0  ;;  %s246_s0 = inlined_call_operand.hbm [shape: f32[40,128], index: 0, kind: input, shape index: {}]   ;;  %s247_s1 = inlined_call_operand.hbm [shape: f32[40,128], index: 1, kind: input, shape index: {}]   ;;  %s248_s2 = inlined_call_operand.hbm [shape: f32[1,128], index: 2, kind: output, shape index: {}]  }
   0x1   :  { %8 = vsyncpa [#allocation7], 0 }
   0x2   :  { %9 = vsyncpa [#allocation5], 0  ;;  %s189_s9 = smov [#allocation3]   ;;  %s117_s13 = scalar_lea.hbm %s246_s0, 640 }
   0x3   :  { %s19_s10 = sshll.u32 %s189_s9, 4  ;;  %p118_p0 = scmp.ne.s32.totalorder %s246_s0, %s117_s13  ;;  %s20_s10 = int_to_ptr.vmem [resolvable:$true] %s19_s10 }
   0x4   :  { %p121_p1 = scmp.lt.u32.totalorder %s117_s13, %s246_s0 }
   0x6   :  { %p123_p2 = pnand %p121_p1, %p118_p0 }
   0x8   :  { %126 = shalt.err (!%p123_p2)
}
   0x9   :  { %s127_s18 = scalar_lea.vmem %s20_s10, 640  ;;  %p132_p4 = scmp.lt.s32.totalorder %s20_s10, %s20_s10 }
   0xa   :  { %p128_p3 = scmp.ne.s32.totalorder %s20_s10, %s127_s18  ;;  %p133_p5 = scmp.lt.s32.totalorder %s127_s18, %s127_s18 }
   0xc   :  { %p134_p6 = por %p133_p5, %p132_p4 }
   0xe   :  { %p135_p7 = pnand %p134_p6, %p128_p3 }
  0x10   :  { %138 = shalt.err (!%p135_p7)
}
  0x11   :  { %s190_s19 = smov 128   ;;  %s191_s20 = smov 8  }
  0x12   :  { %25 = dma.hbm_to_vmem [thread:$0]  %s246_s0, 640, %s20_s10, [#allocation4], %s190_s19, %s190_s19, %s191_s20  }
  0x13   :  { %s192_s23 = smov [#allocation6]   ;;  %s139_s27 = scalar_lea.hbm %s247_s1, 640 }
  0x14   :  { %s35_s24 = sshll.u32 %s192_s23, 4  ;;  %p140_p8 = scmp.ne.s32.totalorder %s247_s1, %s139_s27  ;;  %s36_s24 = int_to_ptr.vmem [resolvable:$true] %s35_s24 }
  0x15   :  { %p143_p9 = scmp.lt.u32.totalorder %s139_s27, %s247_s1 }
  0x17   :  { %p145_p10 = pnand %p143_p9, %p140_p8 }
  0x19   :  { %148 = shalt.err (!%p145_p10)
}
  0x1a   :  { %s149_s4 = scalar_lea.vmem %s36_s24, 640  ;;  %p154_p12 = scmp.lt.s32.totalorder %s36_s24, %s36_s24 }
  0x1b   :  { %p150_p11 = scmp.ne.s32.totalorder %s36_s24, %s149_s4  ;;  %p155_p13 = scmp.lt.s32.totalorder %s149_s4, %s149_s4 }
  0x1d   :  { %p156_p0 = por %p155_p13, %p154_p12 }
  0x1f   :  { %p157_p1 = pnand %p156_p0, %p150_p11 }
  0x21   :  { %160 = shalt.err (!%p157_p1)
}
  0x22   :  { %41 = dma.hbm_to_vmem [thread:$0]  %s247_s1, 640, %s36_s24, [#allocation7], %s190_s19, %s190_s19, %s191_s20  }
  0x23   :  { %183 = dma.done.wait [#allocation4], 640  }
  0x24   :  { %184 = vsyncadd [#allocation4], 4294966656 }
  0x25   :  { %185 = dma.done.wait [#allocation7], 640  }
  0x26   :  { %186 = vsyncadd [#allocation7], 4294966656  ;;  %v193_v0 = vmov 0.0   ;;  %v57_v1 = vld [vmem:[#allocation3] sm:$0xff]  ;;  %v58_v2 = vld [vmem:[#allocation3 + $0x8] sm:$0xff]  ;;  %s194_s1 = smov [#allocation8]  }
  0x27   :  { %56 = vst [vmem:[#allocation2] sm:$0x1] %v193_v0  ;;  %v59_v3 = vld [vmem:[#allocation3 + $0x10] sm:$0xff]  ;;  %v60_v4 = vld [vmem:[#allocation3 + $0x18] sm:$0xff]  ;;  %v61_v5 = vld [vmem:[#allocation3 + $0x20] sm:$0xff]  ;;  %s101_s6 = sshll.u32 %s194_s1, 4  ;;  %s102_s6 = int_to_ptr.vmem [resolvable:$true] %s101_s6 }
  0x28   :  { %v62_v6 = vld [vmem:[#allocation6] sm:$0xff]  ;;  %v63_v7 = vld [vmem:[#allocation6 + $0x8] sm:$0xff]  ;;  %v64_v8 = vld [vmem:[#allocation6 + $0x10] sm:$0xff]  ;;  %s161_s7 = scalar_lea.vmem %s102_s6, 16  ;;  %s165_s8 = scalar_lea.vmem %s102_s6, 32 }
  0x29   :  { %v65_v9 = vld [vmem:[#allocation6 + $0x18] sm:$0xff]  ;;  %v67_v10 = vsub.f32 %v57_v1, %v62_v6  ;;  %v66_v11 = vld [vmem:[#allocation6 + $0x20] sm:$0xff]  ;;  %v68_v12 = vsub.f32 %v58_v2, %v63_v7  ;;  %v69_v13 = vsub.f32 %v59_v3, %v64_v8  ;;  %p162_p2 = scmp.ne.s32.totalorder %s102_s6, %s161_s7  ;;  %p166_p3 = scmp.lt.s32.totalorder %s102_s6, %s102_s6 }
  0x2a   :  { %v70_v14 = vsub.f32 %v60_v4, %v65_v9  ;;  %v71_v16 = vsub.f32 %v61_v5, %v66_v11  ;;  %p167_p4 = scmp.lt.s32.totalorder %s165_s8, %s161_s7 }
  0x2b   :  { %v73_v15 = vmul.f32 %v67_v10, %v67_v10  ;;  %v74_v17 = vmul.f32 %v68_v12, %v68_v12  ;;  %v75_v18 = vmul.f32 %v69_v13, %v69_v13 }
  0x2c   :  { %v76_v19 = vmul.f32 %v70_v14, %v70_v14  ;;  %v77_v21 = vmul.f32 %v71_v16, %v71_v16  ;;  %p168_p5 = por %p167_p4, %p166_p3 }
  0x2d   :  { %v78_v20 = vadd.f32 %v74_v17, %v73_v15 }
  0x2e   :  { %v72_v30 = vld [vmem:[#allocation2] sm:$0x1]  ;;  %p169_p6 = pnand %p168_p5, %p162_p2 }
  0x2f   :  { %v79_v22 = vadd.f32 %v78_v20, %v75_v18 }
  0x31   :  { %v80_v23 = vadd.f32 %v79_v22, %v76_v19 }
  0x33   :  { %v81_v24 = vadd.f32 %v80_v23, %v77_v21 }
  0x35   :  { %v82_v25 = vrot.slane %v81_v24, 4 }
  0x37   :  { %v83_v26 = vadd.f32 %v82_v25, %v81_v24 }
  0x39   :  { %v84_v27 = vrot.slane %v83_v26, 2 }
  0x3b   :  { %v85_v28 = vadd.f32 %v84_v27, %v83_v26 }
  0x3d   :  { %v86_v29 = vrot.slane %v85_v28, 1 }
  0x3f   :  { %v87_v31 = vadd.f32 %v86_v29, %v85_v28 }
  0x41   :  { %v88_v32 = vadd.f32 %v87_v31, %v72_v30 }
  0x43   :  { %89 = vst [vmem:[#allocation2] sm:$0x1] %v88_v32 }
  0x4a   :  { %v93_v33 = vld [vmem:[#allocation2] sm:$0x1] }
  0x4b   :  { %94 = vst [vmem:[#allocation8] sm:$0x1] %v93_v33 }
  0x4c   :  { %172 = shalt.err (!%p169_p6)
}
  0x4d   :  { %s173_s11 = scalar_lea.hbm %s248_s2, 16 }
  0x4e   :  { %p174_p7 = scmp.ne.s32.totalorder %s248_s2, %s173_s11  ;;  %p177_p8 = scmp.lt.u32.totalorder %s173_s11, %s248_s2 }
  0x50   :  { %p179_p9 = pnand %p177_p8, %p174_p7 }
  0x52   :  { %182 = shalt.err (!%p179_p9)
}
  0x53   :  { %104 = dma.vmem_to_hbm [thread:$0]  %s102_s6, 16, %s248_s2, [#allocation5]  }
  0x54   :  { %187 = dma.done.wait [#allocation5], 16  }
  0x55   :  { %188 = vsyncadd [#allocation5], 4294967280 }
  0x56   :  { %108 = vsyncpa [#allocation4], 1 }
  0x57   :  { %109 = vsyncpa [#allocation7], 1 }
  0x58   :  { %110 = vsyncpa [#allocation5], 1 }

</bundles_post_ra>
